<compile_context>
chip_gen: v5e
topology: v5e:2x2
jax: 0.10.0
libtpu: 0.0.40
codegen_flags: <defaults>
</compile_context>

<pallas_src>
import jax
import jax.numpy as jnp
from jax.experimental import pallas as pl
from jax.experimental.pallas import tpu as pltpu

MF_DIM = 16
LAYERS = [64, 32, 16, 8]     # FedNCF layers
MLP_DIM = LAYERS[0] // 2     # 32 (tables kept for parameter-shape fidelity)
MAX_TILE_B = 4096            # safe for v7x (64 MiB VMEM) and v5e/v6e (128 MiB)


def _round_up(x, m):
    return ((x + m - 1) // m) * m


def _ncf_kernel(
    u_ref, iu_ref, ii_ref, tgt_ref,         # batch-tiled: [tb,16] x3, [tb,1]
    w1a_ref, w1b_ref, b1_ref,               # Linear(32,32) split into two [16,32] halves
    w2_ref, b2_ref,                         # Linear(32,16)
    w3_ref, b3_ref,                         # Linear(16,8)
    woa_ref, wob_ref, bo_ref,               # output Linear(24,1) as rows [1,16]/[1,8], bias [1,1]
    prob_ref, loss_ref,                     # outputs: [tb,1] sigmoid, [tb,1] per-row BCE
):
    u = u_ref[...]                          # user latent, shared by GMF and MLP branches

    # GMF branch: elementwise product (reference reads BOTH from mf_embedding_user).
    mf_vec = u * iu_ref[...]                # [tb,16]

    # MLP branch: cat([u, ii]) @ W1 computed as a split matmul (no in-kernel concat).
    h = (jnp.dot(u, w1a_ref[...], preferred_element_type=jnp.float32)
         + jnp.dot(ii_ref[...], w1b_ref[...], preferred_element_type=jnp.float32)
         + b1_ref[...])
    h = jnp.maximum(h, 0.0)                 # [tb,32]

    h = jnp.dot(h, w2_ref[...], preferred_element_type=jnp.float32) + b2_ref[...]
    h = jnp.maximum(h, 0.0)                 # [tb,16]

    h = jnp.dot(h, w3_ref[...], preferred_element_type=jnp.float32) + b3_ref[...]
    h = jnp.maximum(h, 0.0)                 # [tb,8]

    # Output layer over cat([mf_vec, h]) as a VPU multiply + XLU lane reduction
    # (avoids two N=1 MXU matmuls with 1/128-1/256 lane utilization).
    z = (jnp.sum(mf_vec * woa_ref[...], axis=-1, keepdims=True)
         + jnp.sum(h * wob_ref[...], axis=-1, keepdims=True)
         + bo_ref[...])                     # logits [tb,1]

    # Per-row BCE-with-logits (numerically stable); mean is taken outside.
    t = tgt_ref[...]
    loss_ref[...] = jnp.maximum(z, 0.0) - z * t + jnp.log1p(jnp.exp(-jnp.abs(z)))
    prob_ref[...] = jax.nn.sigmoid(z)


def ncf_forward(params, user_input, item_input, target, *, max_tile_b=MAX_TILE_B):
    """Reproduces NeuralCollaborativeFiltering.forward (including its embedding
    re-use quirk: both GMF latents and the MLP user latent come from
    mf_embedding_user; the MLP item latent comes from mf_embedding_item)."""
    B = int(user_input.shape[0])

    # --- batch tiling / padding ---
    tile_b = min(max_tile_b, _round_up(B, 8))
    B_pad = _round_up(B, tile_b)
    pad = B_pad - B

    tgt = target.astype(jnp.float32)
    if pad:
        user_input = jnp.pad(user_input, (0, pad))
        item_input = jnp.pad(item_input, (0, pad))
        tgt = jnp.pad(tgt, (0, pad))
    tgt = tgt.reshape(B_pad, 1)

    # --- plain-JAX glue: embedding gathers (user gather de-duplicated) ---
    u = params["mf_embedding_user"][user_input]    # [B_pad,16] GMF user == MLP user
    iu = params["mf_embedding_user"][item_input]   # [B_pad,16] GMF "item" (same table, as in reference)
    ii = params["mf_embedding_item"][item_input]   # [B_pad,16] MLP item

    # Pre-transpose Linear weights to [in, out]; split along `in` where the
    # reference concatenates inputs.
    w1t = params["w1"].T                     # [32,32]
    w1a, w1b = w1t[:MF_DIM], w1t[MF_DIM:]    # [16,32] each
    w2t = params["w2"].T                     # [32,16]
    w3t = params["w3"].T                     # [16,8]
    woa = params["wo"][:, :MF_DIM]           # [1,16]
    wob = params["wo"][:, MF_DIM:]           # [1,8]

    b1 = params["b1"].reshape(1, -1)
    b2 = params["b2"].reshape(1, -1)
    b3 = params["b3"].reshape(1, -1)
    bo = params["bo"].reshape(1, 1)

    grid = (B_pad // tile_b,)

    def batch_spec(feat):
        return pl.BlockSpec((tile_b, feat), lambda i: (i, 0))

    def const_spec(arr):   # full-array block, resident across the whole grid
        return pl.BlockSpec(arr.shape, lambda i: (0,) * arr.ndim)

    weights = (w1a, w1b, b1, w2t, b2, w3t, b3, woa, wob, bo)

    in_specs = ([batch_spec(MF_DIM)] * 3 + [batch_spec(1)]
                + [const_spec(w) for w in weights])
    out_specs = (batch_spec(1), batch_spec(1))

    probs_pad, loss_rows = pl.pallas_call(
        _ncf_kernel,
        out_shape=(
            jax.ShapeDtypeStruct((B_pad, 1), jnp.float32),   # sigmoid(logits)
            jax.ShapeDtypeStruct((B_pad, 1), jnp.float32),   # per-row BCE terms
        ),
        grid_spec=pltpu.PrefetchScalarGridSpec(
            num_scalar_prefetch=0,
            grid=grid,
            in_specs=in_specs,
            out_specs=out_specs,
        ),
        compiler_params=pltpu.CompilerParams(
            dimension_semantics=("parallel",),       # v7x: shard batch over both TCs
            vmem_limit_bytes=32 * 1024 * 1024,
        ),
    )(u, iu, ii, tgt, *weights)

    probs = probs_pad[:B]
    loss = jnp.sum(loss_rows[:B]) / B
    return probs, loss


def init_params(key, num_users, num_items):
    """Deterministic synthetic parameters matching the module's __init__ shapes."""
    ks = jax.random.split(key, 12)

    def linear(kw, kb, fan_in, fan_out):
        bound = 1.0 / jnp.sqrt(fan_in)
        w = jax.random.uniform(kw, (fan_out, fan_in), jnp.float32, -bound, bound)
        b = jax.random.uniform(kb, (fan_out,), jnp.float32, -bound, bound)
        return w, b

    params = {
        "mf_embedding_user": jax.random.normal(ks[0], (num_users, MF_DIM), jnp.float32),
        "mf_embedding_item": jax.random.normal(ks[1], (num_items, MF_DIM), jnp.float32),
        # defined for shape fidelity; unused by the reference forward()
        "mlp_embedding_user": jax.random.normal(ks[2], (num_users, MLP_DIM), jnp.float32),
        "mlp_embedding_item": jax.random.normal(ks[3], (num_items, MLP_DIM), jnp.float32),
    }
    params["w1"], params["b1"] = linear(ks[4], ks[5], 32, LAYERS[1])          # (32,32)
    params["w2"], params["b2"] = linear(ks[6], ks[7], LAYERS[1], LAYERS[2])   # (16,32)
    params["w3"], params["b3"] = linear(ks[8], ks[9], LAYERS[2], LAYERS[3])   # (8,16)
    params["wo"], params["bo"] = linear(ks[10], ks[11], 24, 1)                # (1,24)
    return params


def _reference_forward(params, user_input, item_input, target):
    """Pure-JAX reference mirroring the PyTorch forward, for a sanity check."""
    mf_u = params["mf_embedding_user"][user_input]
    mf_i = params["mf_embedding_user"][item_input]
    mf_vec = mf_u * mf_i
    mlp_u = params["mf_embedding_user"][user_input]
    mlp_i = params["mf_embedding_item"][item_input]
    h = jnp.concatenate([mlp_u, mlp_i], axis=1)
    h = jnp.maximum(h @ params["w1"].T + params["b1"], 0.0)
    h = jnp.maximum(h @ params["w2"].T + params["b2"], 0.0)
    h = jnp.maximum(h @ params["w3"].T + params["b3"], 0.0)
    pv = jnp.concatenate([mf_vec, h], axis=1)
    z = pv @ params["wo"].T + params["bo"]
    t = target.reshape(-1, 1).astype(jnp.float32)
    loss = jnp.mean(jnp.maximum(z, 0.0) - z * t + jnp.log1p(jnp.exp(-jnp.abs(z))))
    return jax.nn.sigmoid(z), loss


if __name__ == "__main__":
    num_users, num_items = 32, 32
    key = jax.random.PRNGKey(0)
    kp, ku, ki, kt = jax.random.split(key, 4)
    params = init_params(kp, num_users, num_items)

    # Multi-block + padding case: batch=200, tile=64 -> grid of 4, 56 padded rows.
    batch = 200
    user_input = jax.random.randint(ku, (batch,), 0, num_users, dtype=jnp.int32)
    item_input = jax.random.randint(ki, (batch,), 0, num_items, dtype=jnp.int32)
    target = jax.random.bernoulli(kt, 0.5, (batch,)).astype(jnp.float32)

    probs, loss = ncf_forward(params, user_input, item_input, target, max_tile_b=64)
    jax.block_until_ready((probs, loss))

    ref_probs, ref_loss = _reference_forward(params, user_input, item_input, target)
    assert probs.shape == (batch, 1), f"bad probs shape {probs.shape}"
    assert jnp.allclose(probs, ref_probs, atol=1e-5, rtol=1e-5), "probs mismatch"
    assert jnp.allclose(loss, ref_loss, atol=1e-5, rtol=1e-5), "loss mismatch"

    print("KERNEL_OK")
</pallas_src>

<mosaic_0001>
module attributes {stable_mosaic.version = 11 : i64} {
  func.func @_ncf_kernel(%arg0: i32, %arg1: memref<64x16xf32, #tpu.memory_space<vmem>>, %arg2: memref<64x16xf32, #tpu.memory_space<vmem>>, %arg3: memref<64x16xf32, #tpu.memory_space<vmem>>, %arg4: memref<64x1xf32, #tpu.memory_space<vmem>>, %arg5: memref<16x32xf32, #tpu.memory_space<vmem>>, %arg6: memref<16x32xf32, #tpu.memory_space<vmem>>, %arg7: memref<1x32xf32, #tpu.memory_space<vmem>>, %arg8: memref<32x16xf32, #tpu.memory_space<vmem>>, %arg9: memref<1x16xf32, #tpu.memory_space<vmem>>, %arg10: memref<16x8xf32, #tpu.memory_space<vmem>>, %arg11: memref<1x8xf32, #tpu.memory_space<vmem>>, %arg12: memref<1x16xf32, #tpu.memory_space<vmem>>, %arg13: memref<1x8xf32, #tpu.memory_space<vmem>>, %arg14: memref<1x1xf32, #tpu.memory_space<vmem>>, %arg15: memref<64x1xf32, #tpu.memory_space<vmem>>, %arg16: memref<64x1xf32, #tpu.memory_space<vmem>>) attributes {dimension_semantics = [#tpu.dimension_semantics<parallel>], iteration_bounds = array<i64: 4>, scalar_prefetch = 0 : i64, scratch_operands = 0 : i64, tpu.core_type = #tpu.core_type<tc>, window_params = [{transform_indices = @transform_0, window_bounds = array<i64: 64, 16>}, {transform_indices = @transform_1, window_bounds = array<i64: 64, 16>}, {transform_indices = @transform_2, window_bounds = array<i64: 64, 16>}, {transform_indices = @transform_3, window_bounds = array<i64: 64, 1>}, {pipeline_mode = #tpu.pipeline_mode<synchronous>, transform_indices = @transform_4, window_bounds = array<i64: 16, 32>}, {pipeline_mode = #tpu.pipeline_mode<synchronous>, transform_indices = @transform_5, window_bounds = array<i64: 16, 32>}, {pipeline_mode = #tpu.pipeline_mode<synchronous>, transform_indices = @transform_6, window_bounds = array<i64: 1, 32>}, {pipeline_mode = #tpu.pipeline_mode<synchronous>, transform_indices = @transform_7, window_bounds = array<i64: 32, 16>}, {pipeline_mode = #tpu.pipeline_mode<synchronous>, transform_indices = @transform_8, window_bounds = array<i64: 1, 16>}, {pipeline_mode = #tpu.pipeline_mode<synchronous>, transform_indices = @transform_9, window_bounds = array<i64: 16, 8>}, {pipeline_mode = #tpu.pipeline_mode<synchronous>, transform_indices = @transform_10, window_bounds = array<i64: 1, 8>}, {pipeline_mode = #tpu.pipeline_mode<synchronous>, transform_indices = @transform_11, window_bounds = array<i64: 1, 16>}, {pipeline_mode = #tpu.pipeline_mode<synchronous>, transform_indices = @transform_12, window_bounds = array<i64: 1, 8>}, {pipeline_mode = #tpu.pipeline_mode<synchronous>, transform_indices = @transform_13, window_bounds = array<i64: 1, 1>}, {transform_indices = @transform_14, window_bounds = array<i64: 64, 1>}, {transform_indices = @transform_15, window_bounds = array<i64: 64, 1>}]} {
    %c0 = arith.constant 0 : index
    %c0_0 = arith.constant 0 : index
    %0 = vector.load %arg1[%c0, %c0_0] : memref<64x16xf32, #tpu.memory_space<vmem>>, vector<64x16xf32>
    %c0_1 = arith.constant 0 : index
    %c0_2 = arith.constant 0 : index
    %1 = vector.load %arg2[%c0_1, %c0_2] : memref<64x16xf32, #tpu.memory_space<vmem>>, vector<64x16xf32>
    %2 = arith.mulf %0, %1 : vector<64x16xf32>
    %c0_3 = arith.constant 0 : index
    %c0_4 = arith.constant 0 : index
    %3 = vector.load %arg5[%c0_3, %c0_4] : memref<16x32xf32, #tpu.memory_space<vmem>>, vector<16x32xf32>
    %cst = arith.constant dense<0.000000e+00> : vector<64x32xf32>
    %4 = tpu.matmul %0, %3, %cst {dimension_numbers = #tpu.dot_dimension_numbers<[1], [0], [0], [1], [0, 0, 1, 1], [], []>} : vector<64x16xf32>, vector<16x32xf32>, vector<64x32xf32> -> vector<64x32xf32>
    %c0_5 = arith.constant 0 : index
    %c0_6 = arith.constant 0 : index
    %5 = vector.load %arg3[%c0_5, %c0_6] : memref<64x16xf32, #tpu.memory_space<vmem>>, vector<64x16xf32>
    %c0_7 = arith.constant 0 : index
    %c0_8 = arith.constant 0 : index
    %6 = vector.load %arg6[%c0_7, %c0_8] : memref<16x32xf32, #tpu.memory_space<vmem>>, vector<16x32xf32>
    %cst_9 = arith.constant dense<0.000000e+00> : vector<64x32xf32>
    %7 = tpu.matmul %5, %6, %cst_9 {dimension_numbers = #tpu.dot_dimension_numbers<[1], [0], [0], [1], [0, 0, 1, 1], [], []>} : vector<64x16xf32>, vector<16x32xf32>, vector<64x32xf32> -> vector<64x32xf32>
    %8 = arith.addf %4, %7 : vector<64x32xf32>
    %c0_10 = arith.constant 0 : index
    %c0_11 = arith.constant 0 : index
    %9 = vector.load %arg7[%c0_10, %c0_11] : memref<1x32xf32, #tpu.memory_space<vmem>>, vector<1x32xf32>
    %10 = vector.broadcast %9 : vector<1x32xf32> to vector<64x32xf32>
    %11 = arith.addf %8, %10 : vector<64x32xf32>
    %cst_12 = arith.constant 0.000000e+00 : f32
    %12 = vector.broadcast %cst_12 : f32 to vector<64x32xf32>
    %13 = arith.maximumf %11, %12 : vector<64x32xf32>
    %c0_13 = arith.constant 0 : index
    %c0_14 = arith.constant 0 : index
    %14 = vector.load %arg8[%c0_13, %c0_14] : memref<32x16xf32, #tpu.memory_space<vmem>>, vector<32x16xf32>
    %cst_15 = arith.constant dense<0.000000e+00> : vector<64x16xf32>
    %15 = tpu.matmul %13, %14, %cst_15 {dimension_numbers = #tpu.dot_dimension_numbers<[1], [0], [0], [1], [0, 0, 1, 1], [], []>} : vector<64x32xf32>, vector<32x16xf32>, vector<64x16xf32> -> vector<64x16xf32>
    %c0_16 = arith.constant 0 : index
    %c0_17 = arith.constant 0 : index
    %16 = vector.load %arg9[%c0_16, %c0_17] : memref<1x16xf32, #tpu.memory_space<vmem>>, vector<1x16xf32>
    %17 = vector.broadcast %16 : vector<1x16xf32> to vector<64x16xf32>
    %18 = arith.addf %15, %17 : vector<64x16xf32>
    %cst_18 = arith.constant 0.000000e+00 : f32
    %19 = vector.broadcast %cst_18 : f32 to vector<64x16xf32>
    %20 = arith.maximumf %18, %19 : vector<64x16xf32>
    %c0_19 = arith.constant 0 : index
    %c0_20 = arith.constant 0 : index
    %21 = vector.load %arg10[%c0_19, %c0_20] : memref<16x8xf32, #tpu.memory_space<vmem>>, vector<16x8xf32>
    %cst_21 = arith.constant dense<0.000000e+00> : vector<64x8xf32>
    %22 = tpu.matmul %20, %21, %cst_21 {dimension_numbers = #tpu.dot_dimension_numbers<[1], [0], [0], [1], [0, 0, 1, 1], [], []>} : vector<64x16xf32>, vector<16x8xf32>, vector<64x8xf32> -> vector<64x8xf32>
    %c0_22 = arith.constant 0 : index
    %c0_23 = arith.constant 0 : index
    %23 = vector.load %arg11[%c0_22, %c0_23] : memref<1x8xf32, #tpu.memory_space<vmem>>, vector<1x8xf32>
    %24 = vector.broadcast %23 : vector<1x8xf32> to vector<64x8xf32>
    %25 = arith.addf %22, %24 : vector<64x8xf32>
    %cst_24 = arith.constant 0.000000e+00 : f32
    %26 = vector.broadcast %cst_24 : f32 to vector<64x8xf32>
    %27 = arith.maximumf %25, %26 : vector<64x8xf32>
    %c0_25 = arith.constant 0 : index
    %c0_26 = arith.constant 0 : index
    %28 = vector.load %arg12[%c0_25, %c0_26] : memref<1x16xf32, #tpu.memory_space<vmem>>, vector<1x16xf32>
    %29 = vector.broadcast %28 : vector<1x16xf32> to vector<64x16xf32>
    %30 = arith.mulf %2, %29 : vector<64x16xf32>
    %cst_27 = arith.constant dense<0.000000e+00> : vector<64xf32>
    %31 = vector.multi_reduction <add>, %30, %cst_27 [1] : vector<64x16xf32> to vector<64xf32>
    %32 = vector.shape_cast %31 : vector<64xf32> to vector<64x1xf32>
    %c0_28 = arith.constant 0 : index
    %c0_29 = arith.constant 0 : index
    %33 = vector.load %arg13[%c0_28, %c0_29] : memref<1x8xf32, #tpu.memory_space<vmem>>, vector<1x8xf32>
    %34 = vector.broadcast %33 : vector<1x8xf32> to vector<64x8xf32>
    %35 = arith.mulf %27, %34 : vector<64x8xf32>
    %cst_30 = arith.constant dense<0.000000e+00> : vector<64xf32>
    %36 = vector.multi_reduction <add>, %35, %cst_30 [1] : vector<64x8xf32> to vector<64xf32>
    %37 = vector.shape_cast %36 : vector<64xf32> to vector<64x1xf32>
    %38 = arith.addf %32, %37 : vector<64x1xf32>
    %c0_31 = arith.constant 0 : index
    %c0_32 = arith.constant 0 : index
    %39 = vector.load %arg14[%c0_31, %c0_32] : memref<1x1xf32, #tpu.memory_space<vmem>>, vector<1x1xf32>
    %40 = vector.broadcast %39 : vector<1x1xf32> to vector<64x1xf32>
    %41 = arith.addf %38, %40 : vector<64x1xf32>
    %c0_33 = arith.constant 0 : index
    %c0_34 = arith.constant 0 : index
    %42 = vector.load %arg4[%c0_33, %c0_34] : memref<64x1xf32, #tpu.memory_space<vmem>>, vector<64x1xf32>
    %cst_35 = arith.constant 0.000000e+00 : f32
    %43 = vector.broadcast %cst_35 : f32 to vector<64x1xf32>
    %44 = arith.maximumf %41, %43 : vector<64x1xf32>
    %45 = arith.mulf %41, %42 : vector<64x1xf32>
    %46 = arith.subf %44, %45 : vector<64x1xf32>
    %47 = math.absf %41 : vector<64x1xf32>
    %cst_36 = arith.constant 0.000000e+00 : f32
    %48 = vector.broadcast %cst_36 : f32 to vector<64x1xf32>
    %49 = arith.subf %48, %47 : vector<64x1xf32>
    %50 = math.exp %49 : vector<64x1xf32>
    %51 = math.log1p %50 : vector<64x1xf32>
    %52 = arith.addf %46, %51 : vector<64x1xf32>
    %c0_37 = arith.constant 0 : index
    %c0_38 = arith.constant 0 : index
    %53 = vector.load %arg16[%c0_37, %c0_38] : memref<64x1xf32, #tpu.memory_space<vmem>>, vector<64x1xf32>
    tpu.vector_store %arg16[%c0_37, %c0_38], %52 {strides = array<i32>} : memref<64x1xf32, #tpu.memory_space<vmem>>, vector<64x1xf32>,
    %54 = arith.negf %41 : vector<64x1xf32>
    %55 = math.exp %54 : vector<64x1xf32>
    %cst_39 = arith.constant 1.000000e+00 : f32
    %56 = vector.broadcast %cst_39 : f32 to vector<64x1xf32>
    %57 = arith.addf %56, %55 : vector<64x1xf32>
    %58 = arith.divf %56, %57 : vector<64x1xf32>
    %c0_40 = arith.constant 0 : index
    %c0_41 = arith.constant 0 : index
    %59 = vector.load %arg15[%c0_40, %c0_41] : memref<64x1xf32, #tpu.memory_space<vmem>>, vector<64x1xf32>
    tpu.vector_store %arg15[%c0_40, %c0_41], %58 {strides = array<i32>} : memref<64x1xf32, #tpu.memory_space<vmem>>, vector<64x1xf32>,
    return
  }
  func.func @transform_0(%arg0: i32) -> (i32, i32) {
    %c0_i32 = arith.constant 0 : i32
    %c0_i32_0 = arith.constant 0 : i32
    return %arg0, %c0_i32 : i32, i32
  }
  func.func @transform_1(%arg0: i32) -> (i32, i32) {
    %c0_i32 = arith.constant 0 : i32
    %c0_i32_0 = arith.constant 0 : i32
    return %arg0, %c0_i32 : i32, i32
  }
  func.func @transform_2(%arg0: i32) -> (i32, i32) {
    %c0_i32 = arith.constant 0 : i32
    %c0_i32_0 = arith.constant 0 : i32
    return %arg0, %c0_i32 : i32, i32
  }
  func.func @transform_3(%arg0: i32) -> (i32, i32) {
    %c0_i32 = arith.constant 0 : i32
    %c0_i32_0 = arith.constant 0 : i32
    return %arg0, %c0_i32 : i32, i32
  }
  func.func @transform_4(%arg0: i32) -> (i32, i32) {
    %c0_i32 = arith.constant 0 : i32
    %c0_i32_0 = arith.constant 0 : i32
    %c0_i32_1 = arith.constant 0 : i32
    return %c0_i32, %c0_i32_0 : i32, i32
  }
  func.func @transform_5(%arg0: i32) -> (i32, i32) {
    %c0_i32 = arith.constant 0 : i32
    %c0_i32_0 = arith.constant 0 : i32
    %c0_i32_1 = arith.constant 0 : i32
    return %c0_i32, %c0_i32_0 : i32, i32
  }
  func.func @transform_6(%arg0: i32) -> (i32, i32) {
    %c0_i32 = arith.constant 0 : i32
    %c0_i32_0 = arith.constant 0 : i32
    %c0_i32_1 = arith.constant 0 : i32
    return %c0_i32, %c0_i32_0 : i32, i32
  }
  func.func @transform_7(%arg0: i32) -> (i32, i32) {
    %c0_i32 = arith.constant 0 : i32
    %c0_i32_0 = arith.constant 0 : i32
    %c0_i32_1 = arith.constant 0 : i32
    return %c0_i32, %c0_i32_0 : i32, i32
  }
  func.func @transform_8(%arg0: i32) -> (i32, i32) {
    %c0_i32 = arith.constant 0 : i32
    %c0_i32_0 = arith.constant 0 : i32
    %c0_i32_1 = arith.constant 0 : i32
    return %c0_i32, %c0_i32_0 : i32, i32
  }
  func.func @transform_9(%arg0: i32) -> (i32, i32) {
    %c0_i32 = arith.constant 0 : i32
    %c0_i32_0 = arith.constant 0 : i32
    %c0_i32_1 = arith.constant 0 : i32
    return %c0_i32, %c0_i32_0 : i32, i32
  }
  func.func @transform_10(%arg0: i32) -> (i32, i32) {
    %c0_i32 = arith.constant 0 : i32
    %c0_i32_0 = arith.constant 0 : i32
    %c0_i32_1 = arith.constant 0 : i32
    return %c0_i32, %c0_i32_0 : i32, i32
  }
  func.func @transform_11(%arg0: i32) -> (i32, i32) {
    %c0_i32 = arith.constant 0 : i32
    %c0_i32_0 = arith.constant 0 : i32
    %c0_i32_1 = arith.constant 0 : i32
    return %c0_i32, %c0_i32_0 : i32, i32
  }
  func.func @transform_12(%arg0: i32) -> (i32, i32) {
    %c0_i32 = arith.constant 0 : i32
    %c0_i32_0 = arith.constant 0 : i32
    %c0_i32_1 = arith.constant 0 : i32
    return %c0_i32, %c0_i32_0 : i32, i32
  }
  func.func @transform_13(%arg0: i32) -> (i32, i32) {
    %c0_i32 = arith.constant 0 : i32
    %c0_i32_0 = arith.constant 0 : i32
    %c0_i32_1 = arith.constant 0 : i32
    return %c0_i32, %c0_i32_0 : i32, i32
  }
  func.func @transform_14(%arg0: i32) -> (i32, i32) {
    %c0_i32 = arith.constant 0 : i32
    %c0_i32_0 = arith.constant 0 : i32
    return %arg0, %c0_i32 : i32, i32
  }
  func.func @transform_15(%arg0: i32) -> (i32, i32) {
    %c0_i32 = arith.constant 0 : i32
    %c0_i32_0 = arith.constant 0 : i32
    return %arg0, %c0_i32 : i32, i32
  }
}

</mosaic_0001>

<bundles_post_ra>
// kernel: tpu_custom_call.1
= control target key start
LH: loop header
LB: loop body
LE: loop exit
PB: predicated region body
PF: predicated region fallthrough
CT: control target
= control target key end

     0   :  { %s1688_s20 = smov 0   ;;  %s2031_s0 = inlined_call_operand.vmem [shape: f32[256,16], index: 0, kind: input, shape index: {}]   ;;  %s2032_s1 = inlined_call_operand.vmem [shape: f32[256,16], index: 1, kind: input, shape index: {}]   ;;  %s2033_s2 = inlined_call_operand.vmem [shape: f32[256,16], index: 2, kind: input, shape index: {}]   ;;  %s2034_s3 = inlined_call_operand.vmem [shape: f32[256,1], index: 3, kind: input, shape index: {}]   ;;  %s2035_s4 = inlined_call_operand.vmem [shape: f32[16,32], index: 4, kind: input, shape index: {}]   ;;  %s2036_s5 = inlined_call_operand.vmem [shape: f32[16,32], index: 5, kind: input, shape index: {}]   ;;  %s2037_s6 = inlined_call_operand.vmem [shape: f32[1,32], index: 6, kind: input, shape index: {}]   ;;  %s2038_s7 = inlined_call_operand.vmem [shape: f32[32,16], index: 7, kind: input, shape index: {}]   ;;  %s2039_s8 = inlined_call_operand.vmem [shape: f32[1,16], index: 8, kind: input, shape index: {}]   ;;  %s2040_s9 = inlined_call_operand.vmem [shape: f32[16,8], index: 9, kind: input, shape index: {}]   ;;  %s2041_s10 = inlined_call_operand.vmem [shape: f32[1,8], index: 10, kind: input, shape index: {}]   ;;  %s2042_s11 = inlined_call_operand.vmem [shape: f32[1,16], index: 11, kind: input, shape index: {}]   ;;  %s2043_s12 = inlined_call_operand.vmem [shape: f32[1,8], index: 12, kind: input, shape index: {}]   ;;  %s2044_s13 = inlined_call_operand.<no memory space> [shape: f32[1,1], index: 13, kind: input, shape index: {}]   ;;  %s2045_s14 = inlined_call_operand.vmem [shape: f32[256,1], index: 14, kind: output, shape index: {0}]   ;;  %s2046_s15 = inlined_call_operand.vmem [shape: f32[256,1], index: 15, kind: output, shape index: {1}]  }
   0x1   :  { %v21_v0 = vstv %s2044_s13 }
   0x2   :  { %22 = vst [vmem:[#allocation2] sm:$0x1] %v21_v0 }
   0x3 LB: > { %s1460_s21 = sadd.s32 4294967295, %s1603_s20   ;;  %p1464_p0 = scmp.ge.s32.totalorder %s1603_s20, 1  ;;  %s1603_s20 = sphi %s1688_s20, %s28_s20  }
   0x4   : > { %p476_p1 = scmp.lt.s32.totalorder %s1603_s20, 5 }
   0x6   : > { %p477_p2 = pnand %p1464_p0, %p476_p1 }
   0x7   : > { %s1465_s27 = sshll.u32 (!%p477_p2), %s1460_s21, 3 }
   0x8   : > { %480 = sbr.rel (%p477_p2) target bundleno = 638 (0x27e), region = 76  ;;  %p545_p3 = scmp.lt.s32.totalorder (!%p477_p2), %s1465_s27, 31 }
   0xd   : > { %v615_v1 = vld [vmem:[%s2036_s5 + $0x8] sm:$0xff]  ;;  %v614_v3 = vld [vmem:[%s2036_s5] sm:$0xff]  ;;  %s2048_s27 = smov (!%p545_p3, %s1465_s27), 31  ;;  %vm616_vm0 = vcmask 130048   ;;  %v770_v29 = vld [vmem:[%s2038_s7 + $0x18] sm:$0xff]  ;;  %vm775_vm1 = vcmask 261120  }
   0xe   : > { %v605_v2 = vld [vmem:[%s2035_s4 + $0x8] sm:$0xff]  ;;  %655 = vmatpush.msra.mxu0 %v615_v1  ;;  %v604_v4 = vld [vmem:[%s2035_s4] sm:$0xff]  ;;  %s1708_s30 = sshll.u32 %s2048_s27, 3  ;;  %812 = vmatpush.msra.mxu2 %v770_v29  ;;  %v769_v30 = vld [vmem:[%s2038_s7 + $0x10] sm:$0xff]  ;;  %vm976_vm2 = vcmask 64512   ;;  %vm1165_vm3 = vcmask 7168  }
   0xf   : > { %720 = vmatpush.msra.mxu1 %v605_v2  ;;  %s1714_s18 = scalar_lea.vmem %s2033_s2, %s1708_s30  ;;  %s1721_s22 = scalar_lea.vmem %s2031_s0, %s1708_s30  ;;  %v768_v31 = vld [vmem:[%s2038_s7 + $0x8] sm:$0xff]  ;;  %v767_v32 = vld [vmem:[%s2038_s7] sm:$0xff] }
  0x10   : > { %656 = vmatpush.msra.mxu0 %v614_v3  ;;  %v606_v5 = vld [vmem:[%s1714_s18] sm:$0xff]  ;;  %s1728_s24 = scalar_lea.vmem %s2032_s1, %s1708_s30  ;;  %v581_v7 = vld [vmem:[%s1721_s22 + $0x8] sm:$0xff]  ;;  %v583_v10 = vld [vmem:[%s1721_s22 + $0x18] sm:$0xff]  ;;  %813 = vmatpush.msra.mxu2 %v769_v30  ;;  %s1908_s25 = scalar_lea.vmem %s2046_s15, %s1708_s30 }
  0x11   : > { %721 = vmatpush.msra.mxu1 %v604_v4  ;;  %1477 = vmatmul.msk.f32.vlgmr.msra.gmra.mxu0 %vm616_vm0, %v606_v5  ;;  %v1731_v6 = vld [vmem:[%s1721_s22] sm:$0xff]  ;;  %v589_v8 = vld [vmem:[%s1728_s24 + $0x8] sm:$0xff]  ;;  %v591_v11 = vld [vmem:[%s1728_s24 + $0x18] sm:$0xff]  ;;  %s1915_s28 = scalar_lea.vmem %s2045_s14, %s1708_s30 }
  0x12   : > { %1485 = vmatmul.msk.f32.vlgmr.msra.gmra.mxu1 %vm616_vm0, %v1731_v6  ;;  %v1737_v9 = vmul.f32 %v589_v8, %v581_v7  ;;  %v1741_v12 = vmul.f32 %v591_v11, %v583_v10  ;;  %v607_v13 = vld [vmem:[%s1714_s18 + $0x8] sm:$0xff]  ;;  %v608_v14 = vld [vmem:[%s1714_s18 + $0x10] sm:$0xff]  ;;  %v609_v19 = vld [vmem:[%s1714_s18 + $0x18] sm:$0xff]  ;;  %814 = vmatpush.msra.mxu2 %v768_v31 }
  0x13   : > { %v1748_v15 = vld [vmem:[%s1721_s22 + $0x10] sm:$0xff]  ;;  %v587_v20 = vld [vmem:[%s1721_s22 + $0x38] sm:$0xff]  ;;  %v610_v23 = vld [vmem:[%s1714_s18 + $0x20] sm:$0xff] }
  0x14   : > { %v586_v16 = vld [vmem:[%s1721_s22 + $0x30] sm:$0xff]  ;;  %v595_v21 = vld [vmem:[%s1728_s24 + $0x38] sm:$0xff]  ;;  %v1766_v24 = vld [vmem:[%s1721_s22 + $0x20] sm:$0xff]  ;;  %815 = vmatpush.msra.mxu2 %v767_v32 }
  0x15   : > { %v594_v17 = vld [vmem:[%s1728_s24 + $0x30] sm:$0xff]  ;;  %v1762_v22 = vmul.f32 %v595_v21, %v587_v20  ;;  %v611_v25 = vld [vmem:[%s1714_s18 + $0x28] sm:$0xff]  ;;  %v613_v28 = vld [vmem:[%s1714_s18 + $0x38] sm:$0xff] }
  0x16   : > { %v1755_v18 = vmul.f32 %v594_v17, %v586_v16  ;;  %v1773_v26 = vld [vmem:[%s1721_s22 + $0x28] sm:$0xff]  ;;  %v612_v27 = vld [vmem:[%s1714_s18 + $0x30] sm:$0xff]  ;;  %v1527_v34 = vld [vmem:[%s2037_s6] ss:$0 sm:$0xff]  ;;  %s1884_s22 = scalar_lea.vmem %s2034_s3, %s1708_s30 }
  0x17   : > { %v588_v30 = vld [vmem:[%s1728_s24] sm:$0xff]  ;;  %v590_v31 = vld [vmem:[%s1728_s24 + $0x10] sm:$0xff] }
  0x18   : > { %v592_v32 = vld [vmem:[%s1728_s24 + $0x20] sm:$0xff] }
  0x19   : > { %1478 = vmatmul.msk.f32.gmra.mxu0 %vm616_vm0, %v607_v13  ;;  %v850_v13 = vld [vmem:[%s2040_s9 + $0x8] sm:$0xff] }
  0x1a   : > { %1486 = vmatmul.msk.f32.gmra.mxu1 %vm616_vm0, %v581_v7  ;;  %893 = vmatpush.msra.mxu3 %v850_v13 }
  0x21   : > { %1479 = vmatmul.msk.f32.gmra.mxu0 %vm616_vm0, %v608_v14  ;;  %v849_v14 = vld [vmem:[%s2040_s9] sm:$0xff] }
  0x22   : > { %1487 = vmatmul.msk.f32.gmra.mxu1 %vm616_vm0, %v1748_v15  ;;  %894 = vmatpush.msra.mxu3 %v849_v14 }
  0x29   : > { %1480 = vmatmul.msk.f32.gmra.mxu0 %vm616_vm0, %v609_v19 }
  0x2a   : > { %1488 = vmatmul.msk.f32.gmra.mxu1 %vm616_vm0, %v583_v10 }
  0x31   : > { %1481 = vmatmul.msk.f32.gmra.mxu0 %vm616_vm0, %v610_v23 }
  0x32   : > { %1489 = vmatmul.msk.f32.gmra.mxu1 %vm616_vm0, %v1766_v24 }
  0x39   : > { %1482 = vmatmul.msk.f32.gmra.mxu0 %vm616_vm0, %v611_v25 }
  0x3a   : > { %1490 = vmatmul.msk.f32.gmra.mxu1 %vm616_vm0, %v1773_v26 }
  0x41   : > { %1483 = vmatmul.msk.f32.gmra.mxu0 %vm616_vm0, %v612_v27 }
  0x42   : > { %1491 = vmatmul.msk.f32.gmra.mxu1 %vm616_vm0, %v586_v16  ;;  %v1528_v16 = vld [vmem:[%s2039_s8] ss:$0 sm:$0xff] }
  0x49   : > { %1484 = vmatmul.msk.f32.gmra.mxu0 %vm616_vm0, %v613_v28 }
  0x4a   : > { %1492 = vmatmul.msk.f32.gmra.mxu1 %vm616_vm0, %v587_v20 }
  0x8e   : > { %v658_v33 = vpop.f32.mrf.mxu0 }
  0x8f   : > { %v723_v35 = vpop.f32.mrf.mxu1 }
  0x90   : > { %v724_v36 = vadd.f32 %v723_v35, %v658_v33  ;;  %v596_v35 = vmul.f32 %v588_v30, %v1731_v6 }
  0x92   : > { %v751_v37 = vadd.f32 %v1527_v34, %v724_v36  ;;  %v598_v36 = vmul.f32 %v590_v31, %v1748_v15 }
  0x94   : > { %v759_v38 = vmax.f32 %v751_v37, 0.0  ;;  %v600_v37 = vmul.f32 %v592_v32, %v1766_v24 }
  0x96   : > { %1493 = vmatmul.msk.f32.vlgmr.msra.gmra.mxu2 %vm775_vm1, %v759_v38  ;;  %v661_v39 = vpop.f32.mrf.mxu0 }
  0x97   : > { %v726_v40 = vpop.f32.mrf.mxu1 }
  0x98   : > { %v727_v41 = vadd.f32 %v726_v40, %v661_v39  ;;  %v593_v39 = vld [vmem:[%s1728_s24 + $0x28] sm:$0xff]  ;;  %v1529_v40 = vld [vmem:[%s2042_s11] ss:$0 sm:$0xff] }
  0x9a   : > { %v752_v42 = vadd.f32 %v1527_v34, %v727_v41  ;;  %v601_v41 = vmul.f32 %v593_v39, %v1773_v26 }
  0x9c   : > { %v760_v43 = vmax.f32 %v752_v42, 0.0  ;;  %v936_v42 = vmul.f32 %v1529_v40, %v600_v37 }
  0x9e   : > { %1494 = vmatmul.msk.f32.gmra.mxu2 %vm775_vm1, %v760_v43  ;;  %v664_v44 = vpop.f32.mrf.mxu0  ;;  %v932_v43 = vmul.f32 %v1529_v40, %v596_v35  ;;  %v952_v6 = vsel %vm616_vm0, %v936_v42, 0.0 }
  0x9f   : > { %v729_v45 = vpop.f32.mrf.mxu1  ;;  %953 = vadd.xlane.f32.xlu2 %v952_v6 }
  0xa0   : > { %v730_v46 = vadd.f32 %v729_v45, %v664_v44  ;;  %v934_v44 = vmul.f32 %v1529_v40, %v598_v36  ;;  %v940_v15 = vsel %vm616_vm0, %v932_v43, 0.0 }
  0xa1   : > { %941 = vadd.xlane.f32.xlu0 %v940_v15 }
  0xa2   : > { %v753_v47 = vadd.f32 %v1527_v34, %v730_v46  ;;  %v946_v24 = vsel %vm616_vm0, %v934_v44, 0.0 }
  0xa3   : > { %947 = vadd.xlane.f32.xlu1 %v946_v24 }
  0xa4   : > { %v761_v48 = vmax.f32 %v753_v47, 0.0 }
  0xa6   : > { %1495 = vmatmul.msk.f32.gmra.mxu2 %vm775_vm1, %v761_v48  ;;  %v667_v49 = vpop.f32.mrf.mxu0  ;;  %v937_v48 = vmul.f32 %v1529_v40, %v601_v41 }
  0xa7   : > { %v732_v50 = vpop.f32.mrf.mxu1 }
  0xa8   : > { %v733_v51 = vadd.f32 %v732_v50, %v667_v49  ;;  %v955_v26 = vsel %vm616_vm0, %v937_v48, 0.0 }
  0xa9   : > { %956 = vadd.xlane.f32.xlu2 %v955_v26 }
  0xaa   : > { %v754_v52 = vadd.f32 %v1527_v34, %v733_v51 }
  0xac   : > { %v762_v53 = vmax.f32 %v754_v52, 0.0 }
  0xae   : > { %1496 = vmatmul.msk.f32.gmra.mxu2 %vm775_vm1, %v762_v53  ;;  %v670_v54 = vpop.f32.mrf.mxu0 }
  0xaf   : > { %v735_v55 = vpop.f32.mrf.mxu1 }
  0xb0   : > { %v736_v56 = vadd.f32 %v735_v55, %v670_v54 }
  0xb2   : > { %v755_v57 = vadd.f32 %v1527_v34, %v736_v56 }
  0xb4   : > { %v763_v58 = vmax.f32 %v755_v57, 0.0 }
  0xb6   : > { %1497 = vmatmul.msk.f32.gmra.mxu2 %vm775_vm1, %v763_v58  ;;  %v673_v59 = vpop.f32.mrf.mxu0  ;;  %v933_v58 = vmul.f32 %v1529_v40, %v1737_v9  ;;  %v1530_v9 = vld [vmem:[%s2041_s10] ss:$0 sm:$0xff] }
  0xb7   : > { %v738_v60 = vpop.f32.mrf.mxu1 }
  0xb8   : > { %v739_v61 = vadd.f32 %v738_v60, %v673_v59  ;;  %v943_v59 = vsel %vm616_vm0, %v933_v58, 0.0  ;;  %v935_v60 = vmul.f32 %v1529_v40, %v1741_v12  ;;  %v1531_v12 = vld [vmem:[%s2043_s12] ss:$0 sm:$0xff] }
  0xb9   : > { %944 = vadd.xlane.f32.xlu0 %v943_v59 }
  0xba   : > { %v756_v62 = vadd.f32 %v1527_v34, %v739_v61  ;;  %v949_v61 = vsel %vm616_vm0, %v935_v60, 0.0 }
  0xbb   : > { %950 = vadd.xlane.f32.xlu1 %v949_v61 }
  0xbc   : > { %v764_v63 = vmax.f32 %v756_v62, 0.0  ;;  %v938_v62 = vmul.f32 %v1529_v40, %v1755_v18 }
  0xbe   : > { %1498 = vmatmul.msk.f32.gmra.mxu2 %vm775_vm1, %v764_v63  ;;  %v676_v0 = vpop.f32.mrf.mxu0  ;;  %v958_v63 = vsel %vm616_vm0, %v938_v62, 0.0 }
  0xbf   : > { %v741_v1 = vpop.f32.mrf.mxu1 }
  0xc0   : > { %v742_v2 = vadd.f32 %v741_v1, %v676_v0  ;;  %v939_v0 = vmul.f32 %v1529_v40, %v1762_v22 }
  0xc1   : > { %959 = vadd.xlane.f32.xlu0 %v958_v63 }
  0xc2   : > { %v757_v3 = vadd.f32 %v1527_v34, %v742_v2  ;;  %v961_v1 = vsel %vm616_vm0, %v939_v0, 0.0 }
  0xc3   : > { %962 = vadd.xlane.f32.xlu1 %v961_v1 }
  0xc4   : > { %v765_v4 = vmax.f32 %v757_v3, 0.0 }
  0xc6   : > { %1499 = vmatmul.msk.f32.gmra.mxu2 %vm775_vm1, %v765_v4  ;;  %v679_v5 = vpop.f32.mrf.mxu0 }
  0xc7   : > { %v744_v7 = vpop.f32.mrf.mxu1 }
  0xc8   : > { %v745_v8 = vadd.f32 %v744_v7, %v679_v5 }
  0xca   : > { %v758_v10 = vadd.f32 %v1527_v34, %v745_v8 }
  0xcc   : > { %v766_v11 = vmax.f32 %v758_v10, 0.0 }
  0xce   : > { %1500 = vmatmul.msk.f32.gmra.mxu2 %vm775_vm1, %v766_v11 }
 0x112   : > { %v1861_v24 = vpop.xlane.xlu2 %953 }
 0x114   : > { %v942_v15 = vpop.xlane.xlu0 %941 }
 0x119   : > { %v817_v17 = vpop.f32.mrf.mxu2 }
 0x11a   : > { %v818_v19 = vadd.f32 %v1528_v16, %v817_v17 }
 0x11c   : > { %v841_v20 = vmax.f32 %v818_v19, 0.0  ;;  %v1863_v26 = vpop.xlane.xlu2 %956 }
 0x11e   : > { %1501 = vmatmul.msk.f32.vlgmr.msra.gmra.mxu3 %vm616_vm0, %v841_v20 }
 0x121   : > { %v820_v21 = vpop.f32.mrf.mxu2 }
 0x122   : > { %v821_v23 = vadd.f32 %v1528_v16, %v820_v21 }
 0x124   : > { %v842_v25 = vmax.f32 %v821_v23, 0.0 }
 0x126   : > { %1502 = vmatmul.msk.f32.gmra.mxu3 %vm616_vm0, %v842_v25 }
 0x129   : > { %v823_v27 = vpop.f32.mrf.mxu2 }
 0x12a   : > { %v824_v28 = vadd.f32 %v1528_v16, %v823_v27 }
 0x12c   : > { %v843_v29 = vmax.f32 %v824_v28, 0.0  ;;  %v945_v48 = vpop.xlane.xlu0 %944 }
 0x12e   : > { %1503 = vmatmul.msk.f32.gmra.mxu3 %vm616_vm0, %v843_v29 }
 0x131   : > { %v826_v33 = vpop.f32.mrf.mxu2 }
 0x132   : > { %v827_v34 = vadd.f32 %v1528_v16, %v826_v33 }
 0x134   : > { %v844_v38 = vmax.f32 %v827_v34, 0.0 }
 0x136   : > { %1504 = vmatmul.msk.f32.gmra.mxu3 %vm616_vm0, %v844_v38 }
 0x139   : > { %v829_v45 = vpop.f32.mrf.mxu2 }
 0x13a   : > { %v830_v46 = vadd.f32 %v1528_v16, %v829_v45 }
 0x13c   : > { %v845_v47 = vmax.f32 %v830_v46, 0.0 }
 0x13e   : > { %1505 = vmatmul.msk.f32.gmra.mxu3 %vm616_vm0, %v845_v47  ;;  %v948_v47 = vpop.xlane.xlu1 %947 }
 0x141   : > { %v832_v49 = vpop.f32.mrf.mxu2 }
 0x142   : > { %v833_v50 = vadd.f32 %v1528_v16, %v832_v49 }
 0x144   : > { %v846_v51 = vmax.f32 %v833_v50, 0.0  ;;  %v1865_v50 = vpop.xlane.xlu0 %959 }
 0x146   : > { %1506 = vmatmul.msk.f32.gmra.mxu3 %vm616_vm0, %v846_v51  ;;  %v951_v49 = vpop.xlane.xlu1 %950  ;;  %v1867_v51 = vld [vmem:[#allocation2] ss:$0 sm:$0xff] }
 0x149   : > { %v835_v52 = vpop.f32.mrf.mxu2 }
 0x14a   : > { %v836_v53 = vadd.f32 %v1528_v16, %v835_v52 }
 0x14c   : > { %v847_v54 = vmax.f32 %v836_v53, 0.0 }
 0x14e   : > { %1507 = vmatmul.msk.f32.gmra.mxu3 %vm616_vm0, %v847_v54 }
 0x151   : > { %v838_v55 = vpop.f32.mrf.mxu2 }
 0x152   : > { %v839_v56 = vadd.f32 %v1528_v16, %v838_v55 }
 0x154   : > { %v848_v57 = vmax.f32 %v839_v56, 0.0 }
 0x156   : > { %1508 = vmatmul.msk.f32.gmra.mxu3 %vm616_vm0, %v848_v57  ;;  %v1870_v57 = vpop.xlane.xlu1 %962 }
 0x1a1   : > { %v896_v2 = vpop.f32.mrf.mxu3 }
 0x1a2   : > { %v897_v3 = vadd.f32 %v1530_v9, %v896_v2 }
 0x1a4   : > { %v920_v18 = vmax.f32 %v897_v3, 0.0 }
 0x1a6   : > { %v968_v4 = vmul.f32 %v1531_v12, %v920_v18 }
 0x1a8   : > { %v977_v5 = vsel %vm976_vm2, %v968_v4, 0.0 }
 0x1a9   : > { %v899_v7 = vpop.f32.mrf.mxu3  ;;  %978 = vadd.xlane.f32.xlu2 %v977_v5 }
 0x1aa   : > { %v900_v22 = vadd.f32 %v1530_v9, %v899_v7 }
 0x1ac   : > { %v921_v8 = vmax.f32 %v900_v22, 0.0 }
 0x1ae   : > { %v969_v10 = vmul.f32 %v1531_v12, %v921_v8  ;;  %v1021_v8 = vld [vmem:[%s1884_s22] sm:$0xff] }
 0x1b0   : > { %v980_v11 = vsel %vm976_vm2, %v969_v10, 0.0 }
 0x1b1   : > { %v902_v13 = vpop.f32.mrf.mxu3  ;;  %981 = vadd.xlane.f32.xlu0 %v980_v11  ;;  %v1022_v11 = vld [vmem:[%s1884_s22 + $0x8] sm:$0xff] }
 0x1b2   : > { %v903_v14 = vadd.f32 %v1530_v9, %v902_v13 }
 0x1b4   : > { %v922_v16 = vmax.f32 %v903_v14, 0.0 }
 0x1b6   : > { %v970_v17 = vmul.f32 %v1531_v12, %v922_v16 }
 0x1b8   : > { %v983_v19 = vsel %vm976_vm2, %v970_v17, 0.0 }
 0x1b9   : > { %v905_v20 = vpop.f32.mrf.mxu3  ;;  %984 = vadd.xlane.f32.xlu1 %v983_v19 }
 0x1ba   : > { %v906_v21 = vadd.f32 %v1530_v9, %v905_v20 }
 0x1bc   : > { %v923_v23 = vmax.f32 %v906_v21, 0.0 }
 0x1be   : > { %v971_v25 = vmul.f32 %v1531_v12, %v923_v23 }
 0x1c0   : > { %v986_v27 = vsel %vm976_vm2, %v971_v25, 0.0 }
 0x1c1   : > { %v908_v28 = vpop.f32.mrf.mxu3  ;;  %987 = vadd.xlane.f32.xlu2 %v986_v27 }
 0x1c2   : > { %v909_v29 = vadd.f32 %v1530_v9, %v908_v28 }
 0x1c4   : > { %v924_v30 = vmax.f32 %v909_v29, 0.0 }
 0x1c6   : > { %v972_v31 = vmul.f32 %v1531_v12, %v924_v30 }
 0x1c8   : > { %v989_v32 = vsel %vm976_vm2, %v972_v31, 0.0 }
 0x1c9   : > { %v911_v33 = vpop.f32.mrf.mxu3  ;;  %990 = vadd.xlane.f32.xlu0 %v989_v32 }
 0x1ca   : > { %v912_v34 = vadd.f32 %v1530_v9, %v911_v33 }
 0x1cc   : > { %v925_v35 = vmax.f32 %v912_v34, 0.0 }
 0x1ce   : > { %v973_v36 = vmul.f32 %v1531_v12, %v925_v35 }
 0x1d0   : > { %v992_v37 = vsel %vm976_vm2, %v973_v36, 0.0 }
 0x1d1   : > { %v914_v38 = vpop.f32.mrf.mxu3  ;;  %993 = vadd.xlane.f32.xlu1 %v992_v37 }
 0x1d2   : > { %v915_v39 = vadd.f32 %v1530_v9, %v914_v38 }
 0x1d4   : > { %v926_v40 = vmax.f32 %v915_v39, 0.0 }
 0x1d6   : > { %v974_v41 = vmul.f32 %v1531_v12, %v926_v40 }
 0x1d8   : > { %v995_v42 = vsel %vm976_vm2, %v974_v41, 0.0 }
 0x1d9   : > { %v917_v43 = vpop.f32.mrf.mxu3  ;;  %996 = vadd.xlane.f32.xlu2 %v995_v42 }
 0x1da   : > { %v918_v44 = vadd.f32 %v1530_v9, %v917_v43 }
 0x1dc   : > { %v927_v45 = vmax.f32 %v918_v44, 0.0 }
 0x1de   : > { %v975_v46 = vmul.f32 %v1531_v12, %v927_v45 }
 0x1e0   : > { %v998_v6 = vsel %vm976_vm2, %v975_v46, 0.0 }
 0x1e1   : > { %999 = vadd.xlane.f32.xlu0 %v998_v6 }
 0x21c   : > { %v979_v52 = vpop.xlane.xlu2 %978 }
 0x21d   : > { %v1001_v53 = vadd.f32 %v979_v52, %v942_v15 }
 0x21f   : > { %v1013_v54 = vadd.f32 %v1867_v51, %v1001_v53 }
 0x221   : > { %v1053_v55 = vand.u32 2147483647, %v1013_v54  ;;  %v1509_v56 = vmul.f32 -1.442695, %v1013_v54  ;;  %v1029_v17 = vmax.f32 %v1013_v54, 0.0  ;;  %v1037_v21 = vmul.f32 %v1021_v8, %v1013_v54 }
 0x223   : > { %v1061_v58 = vsub.f32 0.0, %v1053_v55  ;;  %1533 = vpow2.f32 %v1509_v56  ;;  %v1045_v43 = vsub.f32 %v1029_v17, %v1037_v21 }
 0x224   : > { %v982_v59 = vpop.xlane.xlu0 %981 }
 0x225   : > { %v1069_v60 = vmul.f32 1.442695, %v1061_v58  ;;  %v1002_v61 = vadd.f32 %v982_v59, %v945_v48 }
 0x227   : > { %1535 = vpow2.f32 %v1069_v60  ;;  %v1873_v62 = vadd.f32 %v1867_v51, %v1002_v61 }
 0x229   : > { %v1534_v63 = vpop.eup %1533  ;;  %v1054_v0 = vand.u32 2147483647, %v1873_v62  ;;  %v1510_v1 = vmul.f32 -1.442695, %v1873_v62  ;;  %v1030_v25 = vmax.f32 %v1873_v62, 0.0  ;;  %v1038_v30 = vmul.f32 %v1022_v11, %v1873_v62 }
 0x22a   : > { %v1877_v9 = vadd.f32 1.0, %v1534_v63 }
 0x22b   : > { %v1062_v2 = vsub.f32 0.0, %v1054_v0  ;;  %1537 = vpow2.f32 %v1510_v1 }
 0x22c   : > { %1539 = vrcp.f32 %v1877_v9  ;;  %v985_v3 = vpop.xlane.xlu1 %984  ;;  %v1215_v29 = vand.u32 2147483647, %v1877_v9  ;;  %v1217_v38 = vand.u32 2147483648, %v1877_v9  ;;  %vm1211_vm6 = vweird.f32 %v1877_v9 }
 0x22d   : > { %v1536_v12 = vpop.eup %1535  ;;  %v1071_v18 = vmul.f32 1.442695, %v1062_v2  ;;  %v1003_v4 = vadd.f32 %v985_v3, %v948_v47 }
 0x22e   : > { %v1085_v5 = vadd.f32 1.0, %v1536_v12  ;;  %v1088_v7 = vmul.f32 -0.5, %v1536_v12  ;;  %v1091_v28 = vand.u32 2147483647, %v1536_v12  ;;  %v1218_v48 = vor.u32 1.1754944e-38, %v1217_v38 }
 0x22f   : > { %1541 = vpow2.f32 %v1071_v18  ;;  %v1887_v22 = vadd.f32 %v1867_v51, %v1003_v4  ;;  %vm1216_vm8 = vcmp.eq.f32.partialorder %v1215_v29, 8.507059e+37 }
 0x230   : > { %1543 = vlog2.f32 %v1085_v5  ;;  %v1089_v19 = vadd.f32 1.0, %v1088_v7  ;;  %vm1092_vm5 = vcmp.lt.f32.partialorder %v1091_v28, 0.0004427343 }
 0x231   : > { %v1538_v10 = vpop.eup %1537  ;;  %v1055_v13 = vand.u32 2147483647, %v1887_v22  ;;  %v1511_v14 = vmul.f32 -1.442695, %v1887_v22 }
 0x232   : > { %v1540_v16 = vpop.eup %1539  ;;  %v1893_v20 = vadd.f32 1.0, %v1538_v10  ;;  %v1090_v37 = vmul.f32 %v1536_v12, %v1089_v19  ;;  %v1031_v10 = vmax.f32 %v1887_v22, 0.0 }
 0x233   : > { %v1207_v23 = vmul.f32 %v1540_v16, %v1877_v9  ;;  %v1063_v27 = vsub.f32 0.0, %v1055_v13  ;;  %vm1212_vm4 = vweird.f32 %v1540_v16  ;;  %v1023_v9 = vld [vmem:[%s1884_s22 + $0x10] sm:$0xff] }
 0x234   : > { %1545 = vrcp.f32 %v1893_v20  ;;  %v988_v31 = vpop.xlane.xlu2 %987  ;;  %vm1213_vm7 = vmor %vm1211_vm6, %vm1212_vm4  ;;  %v1230_v59 = vand.u32 2147483647, %v1893_v20  ;;  %v1232_v1 = vand.u32 2147483648, %v1893_v20  ;;  %v1039_v11 = vmul.f32 %v1023_v9, %v1887_v22 }
 0x235   : > { %v1542_v32 = vpop.eup %1541  ;;  %v1208_v33 = vsub.f32 1.0, %v1207_v23  ;;  %v1073_v34 = vmul.f32 1.442695, %v1063_v27  ;;  %1547 = vpow2.f32 %v1511_v14  ;;  %v1004_v35 = vadd.f32 %v988_v31, %v951_v49 }
 0x236   : > { %v1544_v36 = vpop.eup %1543  ;;  %v1094_v39 = vadd.f32 1.0, %v1542_v32  ;;  %v1097_v40 = vmul.f32 -0.5, %v1542_v32  ;;  %v1046_v49 = vsub.f32 %v1030_v25, %v1038_v30  ;;  %v1100_v58 = vand.u32 2147483647, %v1542_v32 }
 0x237   : > { %v1087_v41 = vmul.f32 0.6931472, %v1544_v36  ;;  %v1209_v42 = vmul.f32 %v1540_v16, %v1208_v33  ;;  %1549 = vpow2.f32 %v1073_v34  ;;  %v1902_v44 = vadd.f32 %v1867_v51, %v1004_v35 }
 0x238   : > { %1551 = vlog2.f32 %v1094_v39  ;;  %v1098_v6 = vadd.f32 1.0, %v1097_v40  ;;  %vm1101_vm10 = vcmp.lt.f32.partialorder %v1100_v58, 0.0004427343  ;;  %vm1226_vm11 = vweird.f32 %v1893_v20 }
 0x239   : > { %v1093_v45 = vsel %vm1092_vm5, %v1090_v37, %v1087_v41  ;;  %v1210_v46 = vadd.f32 %v1540_v16, %v1209_v42  ;;  %v1056_v55 = vand.u32 2147483647, %v1902_v44  ;;  %v1512_v18 = vmul.f32 -1.442695, %v1902_v44 }
 0x23a   : > { %v1546_v15 = vpop.eup %1545  ;;  %v1157_v47 = vadd.f32 %v1093_v45, %v1045_v43  ;;  %v1099_v63 = vmul.f32 %v1542_v32, %v1098_v6  ;;  %vm1231_vm13 = vcmp.eq.f32.partialorder %v1230_v59, 8.507059e+37  ;;  %v1233_v19 = vor.u32 1.1754944e-38, %v1232_v1 }
 0x23b   : > { %v1548_v52 = vpop.eup %1547  ;;  %v1214_v53 = vsel %vm1213_vm7, %v1540_v16, %v1210_v46  ;;  %v1222_v54 = vmul.f32 %v1546_v15, %v1893_v20  ;;  %v1064_v2 = vsub.f32 0.0, %v1056_v55  ;;  %vm1227_vm9 = vweird.f32 %v1546_v15 }
 0x23c   : > { %1166 = vst.msk [vmem:[%s1908_s25] sm:$0xff] %vm1165_vm3, %v1157_v47  ;;  %v1219_v56 = vsel %vm1216_vm8, %v1218_v48, %v1214_v53  ;;  %v1922_v60 = vadd.f32 1.0, %v1548_v52  ;;  %v991_v61 = vpop.xlane.xlu0 %990  ;;  %vm1228_vm12 = vmor %vm1226_vm11, %vm1227_vm9  ;;  %v1047_v30 = vsub.f32 %v1031_v10, %v1039_v11  ;;  %v1032_v58 = vmax.f32 %v1902_v44, 0.0 }
 0x23d   : > { %v1550_v62 = vpop.eup %1549  ;;  %1326 = vst.msk [vmem:[%s1915_s28] sm:$0xff] %vm1165_vm3, %v1219_v56  ;;  %v1223_v0 = vsub.f32 1.0, %v1222_v54  ;;  %v1005_v8 = vadd.f32 %v991_v61, %v1861_v24  ;;  %v1075_v16 = vmul.f32 1.442695, %v1064_v2 }
 0x23e   : > { %v1552_v3 = vpop.eup %1551  ;;  %v1103_v12 = vadd.f32 1.0, %v1550_v62  ;;  %1553 = vrcp.f32 %v1922_v60  ;;  %v1106_v7 = vmul.f32 -0.5, %v1550_v62  ;;  %v1109_v27 = vand.u32 2147483647, %v1550_v62 }
 0x23f   : > { %v1096_v4 = vmul.f32 0.6931472, %v1552_v3  ;;  %v1224_v5 = vmul.f32 %v1546_v15, %v1223_v0  ;;  %v1936_v23 = vadd.f32 %v1867_v51, %v1005_v8  ;;  %v1245_v31 = vand.u32 2147483647, %v1922_v60 }
 0x240   : > { %1555 = vlog2.f32 %v1103_v12  ;;  %v1107_v21 = vadd.f32 1.0, %v1106_v7  ;;  %vm1110_vm14 = vcmp.lt.f32.partialorder %v1109_v27, 0.0004427343  ;;  %v1247_v39 = vand.u32 2147483648, %v1922_v60  ;;  %v1025_v12 = vld [vmem:[%s1884_s22 + $0x20] sm:$0xff] }
 0x241   : > { %v1102_v13 = vsel %vm1101_vm10, %v1099_v63, %v1096_v4  ;;  %v1225_v14 = vadd.f32 %v1546_v15, %v1224_v5  ;;  %1557 = vpow2.f32 %v1512_v18  ;;  %v1057_v32 = vand.u32 2147483647, %v1936_v23 }
 0x242   : > { %v1158_v17 = vadd.f32 %v1102_v13, %v1046_v49  ;;  %1559 = vpow2.f32 %v1075_v16  ;;  %v1513_v33 = vmul.f32 -1.442695, %v1936_v23  ;;  %v1108_v35 = vmul.f32 %v1550_v62, %v1107_v21 }
 0x243   : > { %v1229_v24 = vsel %vm1228_vm12, %v1546_v15, %v1225_v14  ;;  %v1065_v45 = vsub.f32 0.0, %v1057_v32  ;;  %vm1241_vm0 = vweird.f32 %v1922_v60  ;;  %v1248_v49 = vor.u32 1.1754944e-38, %v1247_v39 }
 0x244   : > { %v1554_v22 = vpop.eup %1553  ;;  %1167 = vst.msk [vmem:[%s1908_s25 + $0x8] sm:$0xff] %vm1165_vm3, %v1158_v17  ;;  %v1234_v25 = vsel %vm1231_vm13, %v1233_v19, %v1229_v24  ;;  %v994_v20 = vpop.xlane.xlu1 %993  ;;  %1561 = vpow2.f32 %v1513_v33  ;;  %vm1246_vm2 = vcmp.eq.f32.partialorder %v1245_v31, 8.507059e+37  ;;  %v1041_v17 = vmul.f32 %v1025_v12, %v1936_v23 }
 0x245   : > { %1327 = vst.msk [vmem:[%s1915_s28 + $0x8] sm:$0xff] %vm1165_vm3, %v1234_v25  ;;  %v1237_v28 = vmul.f32 %v1554_v22, %v1922_v60  ;;  %v1006_v37 = vadd.f32 %v994_v20, %v1863_v26  ;;  %vm1242_vm15 = vweird.f32 %v1554_v22  ;;  %v1024_v26 = vld [vmem:[%s1884_s22 + $0x18] sm:$0xff]  ;;  %v1077_v53 = vmul.f32 1.442695, %v1065_v45 }
 0x246   : > { %v1556_v29 = vpop.eup %1555  ;;  %vm1243_vm1 = vmor %vm1241_vm0, %vm1242_vm15  ;;  %v1040_v59 = vmul.f32 %v1024_v26, %v1902_v44 }
 0x247   : > { %v1105_v34 = vmul.f32 0.6931472, %v1556_v29  ;;  %v1238_v36 = vsub.f32 1.0, %v1237_v28  ;;  %v1558_v38 = vpop.eup %1557  ;;  %v1954_v48 = vadd.f32 %v1867_v51, %v1006_v37 }
 0x248   : > { %v1560_v40 = vpop.eup %1559  ;;  %v1948_v43 = vadd.f32 1.0, %v1558_v38  ;;  %v1048_v3 = vsub.f32 %v1032_v58, %v1040_v59  ;;  %v1026_v38 = vld [vmem:[%s1884_s22 + $0x28] sm:$0xff] }
 0x249   : > { %v1111_v41 = vsel %vm1110_vm14, %v1108_v35, %v1105_v34  ;;  %v1239_v42 = vmul.f32 %v1554_v22, %v1238_v36  ;;  %v1112_v6 = vadd.f32 1.0, %v1560_v40  ;;  %v1115_v15 = vmul.f32 -0.5, %v1560_v40 }
 0x24a   : > { %v1159_v46 = vadd.f32 %v1111_v41, %v1047_v30  ;;  %1563 = vrcp.f32 %v1948_v43  ;;  %v1562_v55 = vpop.eup %1561  ;;  %v1058_v62 = vand.u32 2147483647, %v1954_v48  ;;  %v1514_v63 = vmul.f32 -1.442695, %v1954_v48 }
 0x24b   : > { %v1240_v47 = vadd.f32 %v1554_v22, %v1239_v42  ;;  %1565 = vlog2.f32 %v1112_v6  ;;  %v1116_v60 = vadd.f32 1.0, %v1115_v15  ;;  %v1963_v61 = vadd.f32 1.0, %v1562_v55 }
 0x24c   : > { %1168 = vst.msk [vmem:[%s1908_s25 + $0x10] sm:$0xff] %vm1165_vm3, %v1159_v46  ;;  %v997_v54 = vpop.xlane.xlu2 %996  ;;  %1567 = vpow2.f32 %v1077_v53  ;;  %v1118_v0 = vand.u32 2147483647, %v1560_v40  ;;  %v1066_v18 = vsub.f32 0.0, %v1058_v62  ;;  %v1260_v7 = vand.u32 2147483647, %v1948_v43 }
 0x24d   : > { %v1244_v52 = vsel %vm1243_vm1, %v1554_v22, %v1240_v47  ;;  %v1007_v1 = vadd.f32 %v997_v54, %v1865_v50  ;;  %1569 = vrcp.f32 %v1963_v61  ;;  %v1117_v5 = vmul.f32 %v1560_v40, %v1116_v60 }
 0x24e   : > { %v1249_v56 = vsel %vm1246_vm2, %v1248_v49, %v1244_v52  ;;  %1571 = vpow2.f32 %v1514_v63  ;;  %vm1119_vm4 = vcmp.lt.f32.partialorder %v1118_v0, 0.0004427343  ;;  %v1033_v50 = vmax.f32 %v1936_v23, 0.0 }
 0x24f   : > { %1328 = vst.msk [vmem:[%s1915_s28 + $0x10] sm:$0xff] %vm1165_vm3, %v1249_v56  ;;  %v1973_v8 = vadd.f32 %v1867_v51, %v1007_v1  ;;  %v1079_v11 = vmul.f32 1.442695, %v1066_v18  ;;  %v1262_v16 = vand.u32 2147483648, %v1948_v43  ;;  %vm1256_vm6 = vweird.f32 %v1948_v43  ;;  %v1027_v1 = vld [vmem:[%s1884_s22 + $0x30] sm:$0xff] }
 0x250   : > { %v1564_v9 = vpop.eup %1563  ;;  %vm1261_vm7 = vcmp.eq.f32.partialorder %v1260_v7, 8.507059e+37  ;;  %v1275_v31 = vand.u32 2147483647, %v1963_v61  ;;  %v1277_v37 = vand.u32 2147483648, %v1963_v61  ;;  %v1049_v6 = vsub.f32 %v1033_v50, %v1041_v17 }
 0x251   : > { %v1566_v2 = vpop.eup %1565  ;;  %v1252_v44 = vmul.f32 %v1564_v9, %v1948_v43  ;;  %v1059_v19 = vand.u32 2147483647, %v1973_v8  ;;  %vm1257_vm5 = vweird.f32 %v1564_v9  ;;  %1573 = vpow2.f32 %v1079_v11 }
 0x252   : > { %v1114_v4 = vmul.f32 0.6931472, %v1566_v2  ;;  %v1568_v13 = vpop.eup %1567  ;;  %vm1258_vm8 = vmor %vm1256_vm6, %vm1257_vm5  ;;  %v1263_v30 = vor.u32 1.1754944e-38, %v1262_v16  ;;  %v1515_v39 = vmul.f32 -1.442695, %v1973_v8  ;;  %v1034_v15 = vmax.f32 %v1954_v48, 0.0 }
 0x253   : > { %v1253_v10 = vsub.f32 1.0, %v1252_v44  ;;  %v1121_v22 = vadd.f32 1.0, %v1568_v13  ;;  %v1570_v25 = vpop.eup %1569  ;;  %v1124_v27 = vmul.f32 -0.5, %v1568_v13  ;;  %v1067_v20 = vsub.f32 0.0, %v1059_v19 }
 0x254   : > { %v1120_v14 = vsel %vm1119_vm4, %v1117_v5, %v1114_v4  ;;  %v1572_v28 = vpop.eup %1571  ;;  %v1267_v23 = vmul.f32 %v1570_v25, %v1963_v61  ;;  %v1000_v34 = vpop.xlane.xlu0 %999  ;;  %v1127_v42 = vand.u32 2147483647, %v1568_v13  ;;  %vm1272_vm9 = vweird.f32 %v1570_v25 }
 0x255   : > { %v1160_v24 = vadd.f32 %v1120_v14, %v1048_v3  ;;  %v1254_v21 = vmul.f32 %v1564_v9, %v1253_v10  ;;  %1575 = vlog2.f32 %v1121_v22  ;;  %v1984_v32 = vadd.f32 1.0, %v1572_v28 }
 0x256   : > { %v1081_v33 = vmul.f32 1.442695, %v1067_v20  ;;  %v1268_v36 = vsub.f32 1.0, %v1267_v23  ;;  %v1125_v41 = vadd.f32 1.0, %v1124_v27  ;;  %v1008_v45 = vadd.f32 %v1000_v34, %v1870_v57 }
 0x257   : > { %1169 = vst.msk [vmem:[%s1908_s25 + $0x18] sm:$0xff] %vm1165_vm3, %v1160_v24  ;;  %v1255_v29 = vadd.f32 %v1564_v9, %v1254_v21  ;;  %1577 = vrcp.f32 %v1984_v32  ;;  %v1574_v46 = vpop.eup %1573  ;;  %v1042_v47 = vmul.f32 %v1026_v38, %v1954_v48  ;;  %vm1271_vm10 = vweird.f32 %v1963_v61 }
 0x258   : > { %v1269_v43 = vmul.f32 %v1570_v25, %v1268_v36  ;;  %1579 = vpow2.f32 %v1081_v33  ;;  %vm1276_vm11 = vcmp.eq.f32.partialorder %v1275_v31, 8.507059e+37  ;;  %v1130_v52 = vadd.f32 1.0, %v1574_v46  ;;  %vm1273_vm12 = vmor %vm1271_vm10, %vm1272_vm9 }
 0x259   : > { %v1259_v35 = vsel %vm1258_vm8, %v1564_v9, %v1255_v29  ;;  %1581 = vpow2.f32 %v1515_v39  ;;  %v1126_v54 = vmul.f32 %v1568_v13, %v1125_v41  ;;  %v1278_v57 = vor.u32 1.1754944e-38, %v1277_v37 }
 0x25a   : > { %v1264_v40 = vsel %vm1261_vm7, %v1263_v30, %v1259_v35  ;;  %v1270_v49 = vadd.f32 %v1570_v25, %v1269_v43  ;;  %v1133_v55 = vmul.f32 -0.5, %v1574_v46  ;;  %vm1128_vm13 = vcmp.lt.f32.partialorder %v1127_v42, 0.0004427343 }
 0x25b   : > { %1329 = vst.msk [vmem:[%s1915_s28 + $0x18] sm:$0xff] %vm1165_vm3, %v1264_v40  ;;  %v1576_v26 = vpop.eup %1575  ;;  %1583 = vlog2.f32 %v1130_v52  ;;  %v1998_v48 = vadd.f32 %v1867_v51, %v1008_v45  ;;  %v1050_v63 = vsub.f32 %v1034_v15, %v1042_v47  ;;  %v1136_v3 = vand.u32 2147483647, %v1574_v46  ;;  %v1028_v47 = vld [vmem:[%s1884_s22 + $0x38] sm:$0xff] }
 0x25c   : > { %v1123_v53 = vmul.f32 0.6931472, %v1576_v26  ;;  %v1274_v56 = vsel %vm1273_vm12, %v1570_v25, %v1270_v49  ;;  %v1134_v2 = vadd.f32 1.0, %v1133_v55  ;;  %v1035_v44 = vmax.f32 %v1973_v8, 0.0 }
 0x25d   : > { %v1578_v58 = vpop.eup %1577  ;;  %v1279_v60 = vsel %vm1276_vm11, %v1278_v57, %v1274_v56  ;;  %v1060_v5 = vand.u32 2147483647, %v1998_v48  ;;  %v1292_v7 = vand.u32 2147483648, %v1984_v32  ;;  %v1043_v10 = vmul.f32 %v1027_v1, %v1973_v8 }
 0x25e   : > { %v1129_v59 = vsel %vm1128_vm13, %v1126_v54, %v1123_v53  ;;  %v1580_v61 = vpop.eup %1579  ;;  %1330 = vst.msk [vmem:[%s1915_s28 + $0x20] sm:$0xff] %vm1165_vm3, %v1279_v60  ;;  %v1282_v0 = vmul.f32 %v1578_v58, %v1984_v32  ;;  %v1516_v50 = vmul.f32 -1.442695, %v1998_v48  ;;  %vm1287_vm14 = vweird.f32 %v1578_v58 }
 0x25f   : > { %v1161_v62 = vadd.f32 %v1129_v59, %v1049_v6  ;;  %v1582_v9 = vpop.eup %1581  ;;  %v1139_v12 = vadd.f32 1.0, %v1580_v61  ;;  %v1142_v18 = vmul.f32 -0.5, %v1580_v61  ;;  %v1290_v14 = vand.u32 2147483647, %v1984_v32 }
 0x260   : > { %v1283_v51 = vsub.f32 1.0, %v1282_v0  ;;  %v1204_v4 = vadd.f32 1.0, %v1582_v9  ;;  %v1135_v17 = vmul.f32 %v1574_v46, %v1134_v2  ;;  %vm1286_vm15 = vweird.f32 %v1984_v32 }
 0x261   : > { %1170 = vst.msk [vmem:[%s1908_s25 + $0x20] sm:$0xff] %vm1165_vm3, %v1161_v62  ;;  %1585 = vlog2.f32 %v1139_v12  ;;  %v1584_v11 = vpop.eup %1583  ;;  %v1068_v19 = vsub.f32 0.0, %v1060_v5  ;;  %vm1137_vm0 = vcmp.lt.f32.partialorder %v1136_v3, 0.0004427343  ;;  %v1143_v21 = vadd.f32 1.0, %v1142_v18  ;;  %vm1288_vm1 = vmor %vm1286_vm15, %vm1287_vm14 }
 0x262   : > { %v1284_v13 = vmul.f32 %v1578_v58, %v1283_v51  ;;  %1587 = vrcp.f32 %v1204_v4  ;;  %v1132_v16 = vmul.f32 0.6931472, %v1584_v11  ;;  %v1293_v22 = vor.u32 1.1754944e-38, %v1292_v7 }
 0x263   : > { %1589 = vpow2.f32 %v1516_v50  ;;  %v1145_v25 = vand.u32 2147483647, %v1580_v61  ;;  %v1083_v27 = vmul.f32 1.442695, %v1068_v19  ;;  %vm1291_vm2 = vcmp.eq.f32.partialorder %v1290_v14, 8.507059e+37 }
 0x264   : > { %v1285_v24 = vadd.f32 %v1578_v58, %v1284_v13  ;;  %v1138_v8 = vsel %vm1137_vm0, %v1135_v17, %v1132_v16  ;;  %v1144_v32 = vmul.f32 %v1580_v61, %v1143_v21  ;;  %v1051_v33 = vsub.f32 %v1035_v44, %v1043_v10 }
 0x265   : > { %v1162_v20 = vadd.f32 %v1138_v8, %v1050_v63  ;;  %1591 = vpow2.f32 %v1083_v27  ;;  %vm1146_vm4 = vcmp.lt.f32.partialorder %v1145_v25, 0.0004427343  ;;  %v1307_v40 = vand.u32 2147483648, %v1204_v4 }
 0x266   : > { %v1289_v28 = vsel %vm1288_vm1, %v1578_v58, %v1285_v24  ;;  %v1305_v43 = vand.u32 2147483647, %v1204_v4  ;;  %vm1301_vm6 = vweird.f32 %v1204_v4  ;;  %v1036_v53 = vmax.f32 %v1998_v48, 0.0 }
 0x267   : > { %v1586_v29 = vpop.eup %1585  ;;  %v1294_v23 = vsel %vm1291_vm2, %v1293_v22, %v1289_v28  ;;  %1171 = vst.msk [vmem:[%s1908_s25 + $0x28] sm:$0xff] %vm1165_vm3, %v1162_v20  ;;  %v1308_v15 = vor.u32 1.1754944e-38, %v1307_v40  ;;  %v1044_v54 = vmul.f32 %v1028_v47, %v1998_v48 }
 0x268   : > { %v1588_v30 = vpop.eup %1587  ;;  %v1141_v31 = vmul.f32 0.6931472, %v1586_v29  ;;  %1331 = vst.msk [vmem:[%s1915_s28 + $0x28] sm:$0xff] %vm1165_vm3, %v1294_v23  ;;  %vm1306_vm8 = vcmp.eq.f32.partialorder %v1305_v43, 8.507059e+37 }
 0x269   : > { %v1297_v34 = vmul.f32 %v1588_v30, %v1204_v4  ;;  %v1590_v35 = vpop.eup %1589  ;;  %vm1302_vm5 = vweird.f32 %v1588_v30  ;;  %v1052_v60 = vsub.f32 %v1036_v53, %v1044_v54 }
 0x26a   : > { %v1147_v36 = vsel %vm1146_vm4, %v1144_v32, %v1141_v31  ;;  %v1205_v39 = vadd.f32 1.0, %v1590_v35  ;;  %vm1303_vm7 = vmor %vm1301_vm6, %vm1302_vm5 }
 0x26b   : > { %v1163_v37 = vadd.f32 %v1147_v36, %v1051_v33  ;;  %v1298_v38 = vsub.f32 1.0, %v1297_v34  ;;  %v1592_v41 = vpop.eup %1591 }
 0x26c   : > { %1593 = vrcp.f32 %v1205_v39  ;;  %v1148_v45 = vadd.f32 1.0, %v1592_v41  ;;  %v1151_v6 = vmul.f32 -0.5, %v1592_v41  ;;  %v1154_v55 = vand.u32 2147483647, %v1592_v41 }
 0x26d   : > { %1172 = vst.msk [vmem:[%s1908_s25 + $0x30] sm:$0xff] %vm1165_vm3, %v1163_v37  ;;  %v1299_v42 = vmul.f32 %v1588_v30, %v1298_v38  ;;  %v1322_v63 = vand.u32 2147483648, %v1205_v39  ;;  %v1320_v1 = vand.u32 2147483647, %v1205_v39  ;;  %vm1316_vm11 = vweird.f32 %v1205_v39 }
 0x26e   : > { %1595 = vlog2.f32 %v1148_v45  ;;  %v1152_v57 = vadd.f32 1.0, %v1151_v6  ;;  %vm1155_vm9 = vcmp.lt.f32.partialorder %v1154_v55, 0.0004427343 }
 0x26f   : > { %v1300_v46 = vadd.f32 %v1588_v30, %v1299_v42  ;;  %v1323_v48 = vor.u32 1.1754944e-38, %v1322_v63  ;;  %vm1321_vm13 = vcmp.eq.f32.partialorder %v1320_v1, 8.507059e+37 }
 0x270   : > { %v1153_v62 = vmul.f32 %v1592_v41, %v1152_v57 }
 0x271   : > { %v1304_v26 = vsel %vm1303_vm7, %v1588_v30, %v1300_v46 }
 0x272   : > { %v1309_v49 = vsel %vm1306_vm8, %v1308_v15, %v1304_v26  ;;  %v1594_v52 = vpop.eup %1593 }
 0x273   : > { %1332 = vst.msk [vmem:[%s1915_s28 + $0x30] sm:$0xff] %vm1165_vm3, %v1309_v49  ;;  %v1312_v56 = vmul.f32 %v1594_v52, %v1205_v39  ;;  %vm1317_vm10 = vweird.f32 %v1594_v52 }
 0x274   : > { %v1596_v58 = vpop.eup %1595  ;;  %vm1318_vm12 = vmor %vm1316_vm11, %vm1317_vm10 }
 0x275   : > { %v1313_v59 = vsub.f32 1.0, %v1312_v56  ;;  %v1150_v61 = vmul.f32 0.6931472, %v1596_v58 }
 0x277   : > { %v1314_v0 = vmul.f32 %v1594_v52, %v1313_v59  ;;  %v1156_v9 = vsel %vm1155_vm9, %v1153_v62, %v1150_v61 }
 0x278   : > { %v1164_v2 = vadd.f32 %v1156_v9, %v1052_v60 }
 0x279   : > { %v1315_v3 = vadd.f32 %v1594_v52, %v1314_v0 }
 0x27a   : > { %1173 = vst.msk [vmem:[%s1908_s25 + $0x38] sm:$0xff] %vm1165_vm3, %v1164_v2 }
 0x27b   : > { %v1319_v44 = vsel %vm1318_vm12, %v1594_v52, %v1315_v3 }
 0x27c   : > { %v1324_v12 = vsel %vm1321_vm13, %v1323_v48, %v1319_v44 }
 0x27d   : > { %1333 = vst.msk [vmem:[%s1915_s28 + $0x38] sm:$0xff] %vm1165_vm3, %v1324_v12 }
 0x27e PF: > { %s28_s20 = sadd.s32 1, %s1603_s20  }
 0x27f   : > { %p25_p4 = scmp.ge.s32.totalorder %s28_s20, 6  }
 0x281   :  { %27 = sbr.rel (!%p25_p4) target bundleno = 3 (0x3), region = 127 }

</bundles_post_ra>
